<compile_context>
chip_gen: v7x
topology: tpu7x:2x2x1
jax: 0.10.0
libtpu: 0.0.40
codegen_flags: <defaults>
</compile_context>

<pallas_src>
import functools
import math

import jax
import jax.numpy as jnp
from jax import lax
from jax.experimental import pallas as pl
from jax.experimental.pallas import tpu as pltpu


# ---------------------------------------------------------------------------
# Kernel 1: EqualLinear modulation   style = scale_mod*(s @ Wm^T) + bias*lr_mul
# ---------------------------------------------------------------------------
def _style_linear_kernel(s_ref, wm_ref, b_ref, sty_ref, acc_ref, *, scale, lr_mul):
    k = pl.program_id(0)

    @pl.when(k == 0)
    def _():
        acc_ref[...] = jnp.zeros_like(acc_ref)

    # mod_weight is pre-transposed to (S, Cin) in the wrapper, so this is a
    # plain (B, tk) @ (tk, Cin) matmul with no per-step relayout.
    acc_ref[...] += jnp.dot(s_ref[...], wm_ref[...],
                            preferred_element_type=jnp.float32)

    @pl.when(k == pl.num_programs(0) - 1)
    def _():
        sty_ref[...] = (acc_ref[...] * scale
                        + b_ref[...] * lr_mul).astype(sty_ref.dtype)


# ---------------------------------------------------------------------------
# Kernel 2: modulated conv + demodulation + activation
#   grid = (batch, Cout-tiles), both "parallel"
# ---------------------------------------------------------------------------
def _mod_conv_kernel(x_ref, sty_ref, wsq_ref, w_ref, o_ref, xpad_ref, acc_ref,
                     *, ks, pad, Ho, Wo, eps, act, cdtype):
    # x_ref   : (1, Hin, Win, Cin)  unpadded (zero path) or pre-padded NHWC activations
    # sty_ref : (1, 1, Cin)         per-sample style (f32)
    # wsq_ref : (Cin, tco)          batch-invariant  sum_{kh,kw}(scale*W)^2  (f32, hoisted)
    # w_ref   : (ks*ks, Cin, tco)   shared pre-scaled conv weight, bf16 (weight-stationary)
    # o_ref   : (1, Ho, Wo, tco)
    # xpad_ref: (Hp, Wp, Cin) f32   zero-padded, modulated image (VMEM scratch)
    # acc_ref : (Ho*Wo, tco) f32    MXU accumulator (VMEM scratch)
    _, Hin, Win, cin = x_ref.shape
    tco = o_ref.shape[-1]
    Hp = xpad_ref.shape[0]

    sty = sty_ref[0]                                          # (1, Cin) f32

    # demod[o] = rsqrt( sum_i style_i^2 * wsq[i,o] + eps )  (all f32)
    denom = jnp.dot(sty * sty, wsq_ref[...],
                    preferred_element_type=jnp.float32)       # (1, tco)
    demod = lax.rsqrt(denom + eps)

    # Modulate the input (f32) and place it into the zero-padded VMEM scratch.
    x_mod = x_ref[0].astype(jnp.float32) * sty                # (Hin, Win, Cin)
    if pad > 0:
        xpad_ref[...] = jnp.zeros_like(xpad_ref)
        xpad_ref[pad:pad + Hin, pad:pad + Win, :] = x_mod
    else:
        xpad_ref[...] = x_mod

    # Conv as ks*ks shifted MXU matmuls, bf16 operands, f32 accumulation.
    # The expensive kw (sublane) shift is done once per kw; the kh shift is a
    # cheap row slice of the flattened (Hp*Wo, Cin) view.
    acc_ref[...] = jnp.zeros_like(acc_ref)
    for kw in range(ks):
        xkw = (xpad_ref[:, kw:kw + Wo, :]                     # (Hp, Wo, Cin) f32
               .reshape(Hp * Wo, cin)                         # layout-preserving if Wo % 8 == 0
               .astype(cdtype))                               # bf16 MXU operand
        for kh in range(ks):
            xs = xkw[kh * Wo: kh * Wo + Ho * Wo, :]           # row slice (cheap)
            acc_ref[...] += jnp.dot(xs, w_ref[kh * ks + kw],
                                    preferred_element_type=jnp.float32)

    y = acc_ref[...] * demod                                  # per-output-channel demod (f32)
    if act == "relu":
        y = jnp.maximum(y, 0.0)
    elif act == "lrelu":
        y = jnp.where(y >= 0.0, y, 0.2 * y)
    elif act == "tanh":
        y = jnp.tanh(y)
    # act == 'none': pass-through
    o_ref[...] = y.reshape(1, Ho, Wo, tco).astype(o_ref.dtype)


# ---------------------------------------------------------------------------
# Wrapper
# ---------------------------------------------------------------------------
def modulated_conv2d_forward(x, s, conv_weight, mod_weight, mod_bias, *,
                             ks, padding, act="relu", pad_type="zero",
                             lr_mul=1.0, tk=2048, compute_dtype=jnp.bfloat16):
    """Pallas forward of ModulatedConv2d.

    x           : (B, Cin, H, W)      NCHW, like the PyTorch module
    s           : (B, S)              style code (S = 4096 in the module)
    conv_weight : (1, Cout, Cin, ks, ks)
    mod_weight  : (Cin, S)            EqualLinear weight
    mod_bias    : (Cin,)              EqualLinear bias (bias_init = 1)
    returns     : (B, Cout, Ho, Wo)   NCHW
    """
    B, Cin, H, W = x.shape
    Cout = conv_weight.shape[1]
    S = s.shape[1]
    assert mod_weight.shape == (Cin, S)
    tk = min(tk, S)
    assert S % tk == 0, "style dim must be divisible by the K tile"

    scale = 1.0 / math.sqrt(Cin * ks * ks)        # conv fan-in scale
    scale_mod = 1.0 / math.sqrt(S) * lr_mul       # EqualLinear scale

    # ---- one-time parameter re-layouts (cached as model state in practice) --
    mod_weight_t = jnp.transpose(mod_weight)                       # (S, Cin)
    # (1, Cout, Cin, kh, kw) -> (kh*kw, Cin, Cout), pre-scaled by 1/sqrt(fan_in).
    w_tap_f32 = (scale * conv_weight[0].astype(jnp.float32)
                 ).transpose(2, 3, 1, 0).reshape(ks * ks, Cin, Cout)
    wsq = jnp.sum(w_tap_f32 * w_tap_f32, axis=0)                   # (Cin, Cout) f32 (hoisted demod term)
    w_conv = w_tap_f32.astype(compute_dtype)                       # bf16 MXU operand

    # ---- style = EqualLinear(s): K-tiled grid, f32 accumulator -------------
    style = pl.pallas_call(
        functools.partial(_style_linear_kernel, scale=scale_mod, lr_mul=lr_mul),
        out_shape=jax.ShapeDtypeStruct((B, Cin), jnp.float32),
        grid=(S // tk,),
        in_specs=[
            pl.BlockSpec((B, tk), lambda k: (0, k)),
            pl.BlockSpec((tk, Cin), lambda k: (k, 0)),
            pl.BlockSpec((1, Cin), lambda k: (0, 0)),
        ],
        out_specs=pl.BlockSpec((B, Cin), lambda k: (0, 0)),
        scratch_shapes=[pltpu.VMEM((B, Cin), jnp.float32)],
        compiler_params=pltpu.CompilerParams(
            dimension_semantics=("arbitrary",)),       # K is a reduction axis
        cost_estimate=pl.CostEstimate(
            flops=2 * B * Cin * S,
            transcendentals=0,
            bytes_accessed=(s.dtype.itemsize * B * S
                            + mod_weight.dtype.itemsize * S * Cin
                            + 4 * (Cin + B * Cin))),
    )(s, mod_weight_t, mod_bias.reshape(1, Cin))

    # ---- layout: NCHW -> NHWC so channels land on the lane axis -------------
    x_nhwc = jnp.transpose(x, (0, 2, 3, 1))
    if pad_type == "zero" or padding == 0:
        x_in = x_nhwc                       # zero padding is done in-kernel
        pad_in_kernel = padding
    else:
        # reflect/replicate need neighbour values -> XLA pad fallback
        mode = {"reflect": "reflect", "replicate": "edge"}[pad_type]
        x_in = jnp.pad(x_nhwc,
                       ((0, 0), (padding, padding), (padding, padding), (0, 0)),
                       mode=mode)
        pad_in_kernel = 0
    Hin, Win = x_in.shape[1], x_in.shape[2]
    Hp, Wp = Hin + 2 * pad_in_kernel, Win + 2 * pad_in_kernel
    Ho, Wo = Hp - ks + 1, Wp - ks + 1       # F.conv2d(padding=0), stride=1
    # NOTE: the PyTorch forward ignores its `st` arg (F.conv2d default stride=1).

    # ---- Cout tiling: lane-dense (>=128) output blocks at production sizes --
    if Cout % 256 == 0:
        tco = 256
    elif Cout % 128 == 0:
        tco = 128
    else:
        tco = Cout
    n_co = Cout // tco

    style3 = style.reshape(B, 1, Cin)
    bytes_conv = (x_in.dtype.itemsize * B * Hin * Win * Cin
                  + 4 * B * Cin + 4 * Cin * Cout
                  + w_conv.dtype.itemsize * ks * ks * Cin * Cout
                  + x.dtype.itemsize * B * Ho * Wo * Cout)

    # TODO(synk): add output-row tiling with a ks-1 halo (pl.Element indexing or
    # manual make_async_copy) for very large spatial sizes on v7x's 64 MiB VMEM.
    # (pl.Buffered(1) on the constant weight/wsq blocks would also save one
    #  buffer copy each; left at the default here.)
    out_nhwc = pl.pallas_call(
        functools.partial(_mod_conv_kernel, ks=ks, pad=pad_in_kernel,
                          Ho=Ho, Wo=Wo, eps=1e-8, act=act, cdtype=compute_dtype),
        out_shape=jax.ShapeDtypeStruct((B, Ho, Wo, Cout), x.dtype),
        grid=(B, n_co),
        in_specs=[
            pl.BlockSpec((1, Hin, Win, Cin), lambda b, co: (b, 0, 0, 0)),
            pl.BlockSpec((1, 1, Cin), lambda b, co: (b, 0, 0)),
            pl.BlockSpec((Cin, tco), lambda b, co: (0, co)),
            pl.BlockSpec((ks * ks, Cin, tco), lambda b, co: (0, 0, co)),
        ],
        out_specs=pl.BlockSpec((1, Ho, Wo, tco), lambda b, co: (b, 0, 0, co)),
        scratch_shapes=[pltpu.VMEM((Hp, Wp, Cin), jnp.float32),
                        pltpu.VMEM((Ho * Wo, tco), jnp.float32)],
        compiler_params=pltpu.CompilerParams(
            dimension_semantics=("parallel", "parallel"),   # batch x Cout tiles
            vmem_limit_bytes=64 * 1024 * 1024),
        cost_estimate=pl.CostEstimate(
            flops=2 * B * Ho * Wo * Cin * Cout * ks * ks,
            transcendentals=B * Cout,
            bytes_accessed=bytes_conv),
    )(x_in, style3, wsq, w_conv)

    # Back to the module's NCHW output layout.
    return jnp.transpose(out_nhwc, (0, 3, 1, 2))


# ---------------------------------------------------------------------------
# Pure-JAX reference (mirrors the PyTorch code exactly, f32) for validation.
# ---------------------------------------------------------------------------
def _reference_forward(x, s, conv_weight, mod_weight, mod_bias, *, ks, padding,
                       lr_mul=1.0):
    B, Cin, H, W = x.shape
    Cout = conv_weight.shape[1]
    S = s.shape[1]
    scale = 1.0 / math.sqrt(Cin * ks * ks)
    scale_mod = 1.0 / math.sqrt(S) * lr_mul

    style = s @ (mod_weight * scale_mod).T + mod_bias * lr_mul          # (B, Cin)
    w = scale * conv_weight * style[:, None, :, None, None]             # (B,Cout,Cin,ks,ks)
    demod = lax.rsqrt(jnp.sum(w * w, axis=(2, 3, 4)) + 1e-8)            # (B, Cout)
    w = w * demod[:, :, None, None, None]

    xp = jnp.pad(x, ((0, 0), (0, 0), (padding, padding), (padding, padding)))
    Ho, Wo = H + 2 * padding - ks + 1, W + 2 * padding - ks + 1
    patches = jnp.stack([xp[:, :, kh:kh + Ho, kw:kw + Wo]
                         for kh in range(ks) for kw in range(ks)],
                        axis=2)                                          # (B,Cin,ks*ks,Ho,Wo)
    out = jnp.einsum("bikhw,boik->bohw", patches,
                     w.reshape(B, Cout, Cin, ks * ks))
    return jnp.maximum(out, 0.0)


if __name__ == "__main__":
    key = jax.random.PRNGKey(0)
    k_x, k_s, k_w, k_m = jax.random.split(key, 4)

    B, Cin, Cout, H, W = 2, 4, 8, 16, 16
    ks, padding = 3, 1
    S = 4096      # ModulatedConv2d hard-codes EqualLinear(4096, in_dim)

    x = jax.random.normal(k_x, (B, Cin, H, W), jnp.float32)
    s = jax.random.normal(k_s, (B, S), jnp.float32)
    conv_weight = jax.random.normal(k_w, (1, Cout, Cin, ks, ks), jnp.float32)
    mod_weight = jax.random.normal(k_m, (Cin, S), jnp.float32)   # lr_mul = 1
    mod_bias = jnp.ones((Cin,), jnp.float32)                     # bias_init = 1

    out = modulated_conv2d_forward(x, s, conv_weight, mod_weight, mod_bias,
                                   ks=ks, padding=padding, act="relu")
    out = jax.block_until_ready(out)

    ref = _reference_forward(x, s, conv_weight, mod_weight, mod_bias,
                             ks=ks, padding=padding)
    assert out.shape == (B, Cout, H, W)
    max_err = float(jnp.max(jnp.abs(out - ref)))
    # bf16 MXU operands / f32 accumulation -> looser tolerance than pure f32.
    assert jnp.allclose(out, ref, atol=6e-2, rtol=6e-2), max_err

    print("KERNEL_OK")
</pallas_src>

<mosaic_0001>
module attributes {stable_mosaic.version = 11 : i64} {
  func.func @_style_linear_kernel(%arg0: i32, %arg1: memref<2x2048xf32, #tpu.memory_space<vmem>>, %arg2: memref<2048x4xf32, #tpu.memory_space<vmem>>, %arg3: memref<1x4xf32, #tpu.memory_space<vmem>>, %arg4: memref<2x4xf32, #tpu.memory_space<vmem>>, %arg5: memref<2x4xf32, #tpu.memory_space<vmem>>) attributes {dimension_semantics = [#tpu.dimension_semantics<arbitrary>], iteration_bounds = array<i64: 2>, scalar_prefetch = 0 : i64, scratch_operands = 1 : i64, tpu.core_type = #tpu.core_type<tc>, window_params = [{transform_indices = @transform_0, window_bounds = array<i64: 2, 2048>}, {transform_indices = @transform_1, window_bounds = array<i64: 2048, 4>}, {pipeline_mode = #tpu.pipeline_mode<synchronous>, transform_indices = @transform_2, window_bounds = array<i64: 1, 4>}, {pipeline_mode = #tpu.pipeline_mode<synchronous>, transform_indices = @transform_3, window_bounds = array<i64: 2, 4>}]} {
    %c0_i32 = arith.constant 0 : i32
    %0 = arith.cmpi eq, %arg0, %c0_i32 : i32
    %1 = arith.extui %0 : i1 to i32
    %c0_i32_0 = arith.constant 0 : i32
    %2 = arith.cmpi ne, %1, %c0_i32_0 : i32
    scf.if %2 {
      %cst_9 = arith.constant 0.000000e+00 : f32
      %12 = vector.broadcast %cst_9 : f32 to vector<2x4xf32>
      %c0_10 = arith.constant 0 : index
      %c0_11 = arith.constant 0 : index
      %13 = vector.load %arg5[%c0_10, %c0_11] : memref<2x4xf32, #tpu.memory_space<vmem>>, vector<2x4xf32>
      tpu.vector_store %arg5[%c0_10, %c0_11], %12 {strides = array<i32>} : memref<2x4xf32, #tpu.memory_space<vmem>>, vector<2x4xf32>,
    } else {
    }
    %c0 = arith.constant 0 : index
    %c0_1 = arith.constant 0 : index
    %3 = vector.load %arg5[%c0, %c0_1] : memref<2x4xf32, #tpu.memory_space<vmem>>, vector<2x4xf32>
    %c0_2 = arith.constant 0 : index
    %c0_3 = arith.constant 0 : index
    %4 = vector.load %arg1[%c0_2, %c0_3] : memref<2x2048xf32, #tpu.memory_space<vmem>>, vector<2x2048xf32>
    %c0_4 = arith.constant 0 : index
    %c0_5 = arith.constant 0 : index
    %5 = vector.load %arg2[%c0_4, %c0_5] : memref<2048x4xf32, #tpu.memory_space<vmem>>, vector<2048x4xf32>
    %cst = arith.constant dense<0.000000e+00> : vector<2x4xf32>
    %6 = tpu.matmul %4, %5, %cst {dimension_numbers = #tpu.dot_dimension_numbers<[1], [0], [0], [1], [0, 0, 1, 1], [], []>} : vector<2x2048xf32>, vector<2048x4xf32>, vector<2x4xf32> -> vector<2x4xf32>
    %7 = arith.addf %3, %6 : vector<2x4xf32>
    %c0_6 = arith.constant 0 : index
    %c0_7 = arith.constant 0 : index
    %8 = vector.load %arg5[%c0_6, %c0_7] : memref<2x4xf32, #tpu.memory_space<vmem>>, vector<2x4xf32>
    tpu.vector_store %arg5[%c0_6, %c0_7], %7 {strides = array<i32>} : memref<2x4xf32, #tpu.memory_space<vmem>>, vector<2x4xf32>,
    %c1_i32 = arith.constant 1 : i32
    %9 = arith.cmpi eq, %arg0, %c1_i32 : i32
    %10 = arith.extui %9 : i1 to i32
    %c0_i32_8 = arith.constant 0 : i32
    %11 = arith.cmpi ne, %10, %c0_i32_8 : i32
    scf.if %11 {
      %c0_9 = arith.constant 0 : index
      %c0_10 = arith.constant 0 : index
      %12 = vector.load %arg5[%c0_9, %c0_10] : memref<2x4xf32, #tpu.memory_space<vmem>>, vector<2x4xf32>
      %cst_11 = arith.constant 1.562500e-02 : f32
      %13 = vector.broadcast %cst_11 : f32 to vector<2x4xf32>
      %14 = arith.mulf %12, %13 : vector<2x4xf32>
      %c0_12 = arith.constant 0 : index
      %c0_13 = arith.constant 0 : index
      %15 = vector.load %arg3[%c0_12, %c0_13] : memref<1x4xf32, #tpu.memory_space<vmem>>, vector<1x4xf32>
      %cst_14 = arith.constant 1.000000e+00 : f32
      %16 = vector.broadcast %cst_14 : f32 to vector<1x4xf32>
      %17 = arith.mulf %15, %16 : vector<1x4xf32>
      %18 = vector.broadcast %17 : vector<1x4xf32> to vector<2x4xf32>
      %19 = arith.addf %14, %18 : vector<2x4xf32>
      %c0_15 = arith.constant 0 : index
      %c0_16 = arith.constant 0 : index
      %20 = vector.load %arg4[%c0_15, %c0_16] : memref<2x4xf32, #tpu.memory_space<vmem>>, vector<2x4xf32>
      tpu.vector_store %arg4[%c0_15, %c0_16], %19 {strides = array<i32>} : memref<2x4xf32, #tpu.memory_space<vmem>>, vector<2x4xf32>,
    } else {
    }
    return
  }
  func.func @transform_0(%arg0: i32) -> (i32, i32) {
    %c0_i32 = arith.constant 0 : i32
    %c0_i32_0 = arith.constant 0 : i32
    return %c0_i32, %arg0 : i32, i32
  }
  func.func @transform_1(%arg0: i32) -> (i32, i32) {
    %c0_i32 = arith.constant 0 : i32
    %c0_i32_0 = arith.constant 0 : i32
    return %arg0, %c0_i32 : i32, i32
  }
  func.func @transform_2(%arg0: i32) -> (i32, i32) {
    %c0_i32 = arith.constant 0 : i32
    %c0_i32_0 = arith.constant 0 : i32
    %c0_i32_1 = arith.constant 0 : i32
    return %c0_i32, %c0_i32_0 : i32, i32
  }
  func.func @transform_3(%arg0: i32) -> (i32, i32) {
    %c0_i32 = arith.constant 0 : i32
    %c0_i32_0 = arith.constant 0 : i32
    %c0_i32_1 = arith.constant 0 : i32
    return %c0_i32, %c0_i32_0 : i32, i32
  }
}

</mosaic_0001>

<bundles_post_ra>
// kernel: tpu_custom_call.1
= control target key start
LH: loop header
LB: loop body
LE: loop exit
PB: predicated region body
PF: predicated region fallthrough
CT: control target
= control target key end

     0   :  { %8 = vsyncpa [#allocation4], 0  ;;  %s1805_s12 = smov 0   ;;  %s2158_s0 = inlined_call_operand.vmem [shape: f32[2,4096], index: 0, kind: input, shape index: {}]   ;;  %s2159_s1 = inlined_call_operand.vmem [shape: f32[4096,4], index: 1, kind: input, shape index: {}]   ;;  %s2160_s2 = inlined_call_operand.vmem [shape: f32[1,4], index: 2, kind: input, shape index: {}]   ;;  %s2161_s3 = inlined_call_operand.hbm [shape: f32[2,4], index: 3, kind: output, shape index: {}]  }
   0x1 LB: > { %s1811_s13 = sadd.s32 4294967295, %s1780_s12   ;;  %p1175_p0 = scmp.ge.s32.totalorder %s1780_s12, 1  ;;  %s1780_s12 = sphi %s1805_s12, %s14_s12  }
   0x2   : > { %p145_p1 = scmp.lt.s32.totalorder %s1780_s12, 3 }
   0x4   : > { %p146_p2 = pnand %p1175_p0, %p145_p1 }
   0x5   : > { %s1176_s14 = sshll.u32 (!%p146_p2), %s1811_s13, 4  ;;  %s1178_s15 = sshll.u32 (!%p146_p2), %s1811_s13, 8 }
   0x6   : > { %149 = sbr.rel (%p146_p2) target bundleno = 414 (0x19e), region = 32  ;;  %p170_p3 = scmp.lt.s32.totalorder (!%p146_p2), %s1176_s14, 31 }
   0x7   : > { %p176_p4 = scmp.lt.s32.totalorder (!%p146_p2), %s1178_s15, 511  ;;  %p1180_p5 = scmp.ne.s32.totalorder (!%p146_p2), %s1811_s13, 0 }
   0xd   : > { %s2163_s14 = smov (!%p170_p3, %s1176_s14), 31  ;;  %s2165_s15 = smov (!%p176_p4, %s1178_s15), 511 }
   0xe   : > { %s1177_s16 = sshll.u32 %s2163_s14, 1  ;;  %s1179_s20 = sshll.u32 %s2165_s15, 3  ;;  %vm185_vm0 = vcmask (!%p1180_p5), 25600   ;;  %v1782_v0 = vmov (!%p1180_p5), 0.0  }
   0xf   : > { %s1820_s19 = scalar_lea.vmem %s2158_s0, %s1177_s16  ;;  %s1825_s23 = scalar_lea.vmem %s2159_s1, %s1179_s20  ;;  %186 = vst.msk [vmem:[#allocation2] sm:$0x3] (!%p1180_p5), %vm185_vm0, %v1782_v0 }
  0x10   : > { %184 = sbr.rel (%p1180_p5) target bundleno = 23 (0x17), region = 36 }
  0x17 PF: > { %v208_v1 = vld [vmem:[%s1825_s23 + $0x80] sm:$0xff]  ;;  %v209_v2 = vld [vmem:[%s1825_s23 + $0x88] sm:$0xff]  ;;  %v210_v12 = vld [vmem:[%s1825_s23 + $0x90] sm:$0xff]  ;;  %v1783_v48 = vmov 1983009808   ;;  %v456_v50 = vlaneseq  ;;  %vm1097_vm1 = vcmask 25600  }
  0x18   : > { %v240_v3 = vld [vmem:[%s1825_s23 + $0x180] sm:$0xff]  ;;  %v1467_v4 = vpack.c.bf16 %v209_v2, %v208_v1  ;;  %v241_v5 = vld [vmem:[%s1825_s23 + $0x188] sm:$0xff]  ;;  %v211_v14 = vld [vmem:[%s1825_s23 + $0x98] sm:$0xff]  ;;  %v454_v49 = vunpack.c.l.s4 %v1783_v48  ;;  %p1181_p6 = scmp.ne.s32.totalorder %s1811_s13, 1 }
  0x19   : > { %v192_v6 = vld [vmem:[%s1825_s23] sm:$0xff]  ;;  %v193_v7 = vld [vmem:[%s1825_s23 + $0x8] sm:$0xff]  ;;  %v1499_v8 = vpack.c.bf16 %v241_v5, %v240_v3  ;;  %v242_v15 = vld [vmem:[%s1825_s23 + $0x190] sm:$0xff]  ;;  %v1471_v17 = vpack.c.bf16 %v211_v14, %v210_v12  ;;  %v457_v1 = vshrl.u32 %v456_v50, 7 }
  0x1a   : > { %v1469_v9 = vpack.c.bf16 %v193_v7, %v192_v6  ;;  %v224_v10 = vld [vmem:[%s1825_s23 + $0x100] sm:$0xff]  ;;  %v225_v11 = vld [vmem:[%s1825_s23 + $0x108] sm:$0xff]  ;;  %1468 = vmatprep.subr.bf16.mxu0 %v1467_v4  ;;  %v243_v16 = vld [vmem:[%s1825_s23 + $0x198] sm:$0xff]  ;;  %v455_v0 = vunpack.c.0.s8 %v454_v49 }
  0x1b   : > { %v1501_v13 = vpack.c.bf16 %v225_v11, %v224_v10  ;;  %1500 = vmatprep.subr.bf16.mxu1 %v1499_v8  ;;  %v1503_v18 = vpack.c.bf16 %v243_v16, %v242_v15  ;;  %v194_v19 = vld [vmem:[%s1825_s23 + $0x10] sm:$0xff]  ;;  %v195_v20 = vld [vmem:[%s1825_s23 + $0x18] sm:$0xff]  ;;  %v212_v24 = vld [vmem:[%s1825_s23 + $0xa0] sm:$0xff] }
  0x1c   : > { %1470 = vmatpush3.bf16.msra.mxu0 %v1469_v9  ;;  %v226_v21 = vld [vmem:[%s1825_s23 + $0x110] sm:$0xff]  ;;  %v1473_v22 = vpack.c.bf16 %v195_v20, %v194_v19  ;;  %v227_v23 = vld [vmem:[%s1825_s23 + $0x118] sm:$0xff]  ;;  %v213_v25 = vld [vmem:[%s1825_s23 + $0xa8] sm:$0xff]  ;;  %v1878_v14 = vsub.s32 %v455_v0, %v457_v1 }
  0x1d   : > { %1502 = vmatpush3.bf16.msra.mxu1 %v1501_v13  ;;  %1472 = vmatprep.subr.bf16.mxu0 %v1471_v17  ;;  %v1505_v26 = vpack.c.bf16 %v227_v23, %v226_v21  ;;  %v1475_v27 = vpack.c.bf16 %v213_v25, %v212_v24  ;;  %v244_v28 = vld [vmem:[%s1825_s23 + $0x1a0] sm:$0xff]  ;;  %v245_v29 = vld [vmem:[%s1825_s23 + $0x1a8] sm:$0xff]  ;;  %v214_v36 = vld [vmem:[%s1825_s23 + $0xb0] sm:$0xff] }
  0x1e   : > { %1504 = vmatprep.subr.bf16.mxu1 %v1503_v18  ;;  %v196_v30 = vld [vmem:[%s1825_s23 + $0x20] sm:$0xff]  ;;  %v1507_v31 = vpack.c.bf16 %v245_v29, %v244_v28  ;;  %v197_v32 = vld [vmem:[%s1825_s23 + $0x28] sm:$0xff]  ;;  %v215_v37 = vld [vmem:[%s1825_s23 + $0xb8] sm:$0xff] }
  0x1f   : > { %v228_v33 = vld [vmem:[%s1825_s23 + $0x120] sm:$0xff]  ;;  %v229_v34 = vld [vmem:[%s1825_s23 + $0x128] sm:$0xff]  ;;  %v1477_v35 = vpack.c.bf16 %v197_v32, %v196_v30  ;;  %v246_v38 = vld [vmem:[%s1825_s23 + $0x1b0] sm:$0xff]  ;;  %v1479_v40 = vpack.c.bf16 %v215_v37, %v214_v36 }
  0x20   : > { %1474 = vmatpush3.bf16.msra.mxu0 %v1473_v22  ;;  %v1509_v39 = vpack.c.bf16 %v229_v34, %v228_v33  ;;  %v247_v41 = vld [vmem:[%s1825_s23 + $0x1b8] sm:$0xff]  ;;  %v198_v42 = vld [vmem:[%s1825_s23 + $0x30] sm:$0xff]  ;;  %v216_v47 = vld [vmem:[%s1825_s23 + $0xc0] sm:$0xff] }
  0x21   : > { %1506 = vmatpush3.bf16.msra.mxu1 %v1505_v26  ;;  %1476 = vmatprep.subr.bf16.mxu0 %v1475_v27  ;;  %v199_v43 = vld [vmem:[%s1825_s23 + $0x38] sm:$0xff]  ;;  %v1511_v44 = vpack.c.bf16 %v247_v41, %v246_v38  ;;  %v230_v45 = vld [vmem:[%s1825_s23 + $0x130] sm:$0xff]  ;;  %v217_v51 = vld [vmem:[%s1825_s23 + $0xc8] sm:$0xff] }
  0x22   : > { %1508 = vmatprep.subr.bf16.mxu1 %v1507_v31  ;;  %v231_v46 = vld [vmem:[%s1825_s23 + $0x138] sm:$0xff]  ;;  %v248_v52 = vld [vmem:[%s1825_s23 + $0x1c0] sm:$0xff]  ;;  %v249_v53 = vld [vmem:[%s1825_s23 + $0x1c8] sm:$0xff]  ;;  %v1481_v54 = vpack.c.bf16 %v199_v43, %v198_v42  ;;  %v1483_v56 = vpack.c.bf16 %v217_v51, %v216_v47 }
  0x23   : > { %v1513_v55 = vpack.c.bf16 %v231_v46, %v230_v45  ;;  %v200_v57 = vld [vmem:[%s1825_s23 + $0x40] sm:$0xff]  ;;  %v201_v58 = vld [vmem:[%s1825_s23 + $0x48] sm:$0xff]  ;;  %v1515_v60 = vpack.c.bf16 %v249_v53, %v248_v52  ;;  %v218_v62 = vld [vmem:[%s1825_s23 + $0xd0] sm:$0xff] }
  0x24   : > { %1478 = vmatpush3.bf16.msra.mxu0 %v1477_v35  ;;  %v232_v59 = vld [vmem:[%s1825_s23 + $0x140] sm:$0xff]  ;;  %v233_v61 = vld [vmem:[%s1825_s23 + $0x148] sm:$0xff]  ;;  %v219_v63 = vld [vmem:[%s1825_s23 + $0xd8] sm:$0xff]  ;;  %v1485_v4 = vpack.c.bf16 %v201_v58, %v200_v57 }
  0x25   : > { %1510 = vmatpush3.bf16.msra.mxu1 %v1509_v39  ;;  %1480 = vmatprep.subr.bf16.mxu0 %v1479_v40  ;;  %v250_v2 = vld [vmem:[%s1825_s23 + $0x1d0] sm:$0xff]  ;;  %v251_v3 = vld [vmem:[%s1825_s23 + $0x1d8] sm:$0xff]  ;;  %v1517_v5 = vpack.c.bf16 %v233_v61, %v232_v59  ;;  %v1487_v6 = vpack.c.bf16 %v219_v63, %v218_v62  ;;  %v220_v12 = vld [vmem:[%s1825_s23 + $0xe0] sm:$0xff] }
  0x26   : > { %1512 = vmatprep.subr.bf16.mxu1 %v1511_v44  ;;  %v202_v7 = vld [vmem:[%s1825_s23 + $0x50] sm:$0xff]  ;;  %v203_v8 = vld [vmem:[%s1825_s23 + $0x58] sm:$0xff]  ;;  %v1519_v10 = vpack.c.bf16 %v251_v3, %v250_v2  ;;  %v221_v13 = vld [vmem:[%s1825_s23 + $0xe8] sm:$0xff] }
  0x27   : > { %v234_v9 = vld [vmem:[%s1825_s23 + $0x150] sm:$0xff]  ;;  %v235_v11 = vld [vmem:[%s1825_s23 + $0x158] sm:$0xff]  ;;  %v252_v15 = vld [vmem:[%s1825_s23 + $0x1e0] sm:$0xff]  ;;  %v1489_v17 = vpack.c.bf16 %v203_v8, %v202_v7  ;;  %v1491_v20 = vpack.c.bf16 %v221_v13, %v220_v12 }
  0x28   : > { %1482 = vmatpush3.bf16.msra.mxu0 %v1481_v54  ;;  %v253_v16 = vld [vmem:[%s1825_s23 + $0x1e8] sm:$0xff]  ;;  %v204_v18 = vld [vmem:[%s1825_s23 + $0x60] sm:$0xff]  ;;  %v1521_v19 = vpack.c.bf16 %v235_v11, %v234_v9  ;;  %v222_v26 = vld [vmem:[%s1825_s23 + $0xf0] sm:$0xff] }
  0x29   : > { %1514 = vmatpush3.bf16.msra.mxu1 %v1513_v55  ;;  %1484 = vmatprep.subr.bf16.mxu0 %v1483_v56  ;;  %v205_v21 = vld [vmem:[%s1825_s23 + $0x68] sm:$0xff]  ;;  %v236_v22 = vld [vmem:[%s1825_s23 + $0x160] sm:$0xff]  ;;  %v1523_v24 = vpack.c.bf16 %v253_v16, %v252_v15  ;;  %v223_v27 = vld [vmem:[%s1825_s23 + $0xf8] sm:$0xff] }
  0x2a   : > { %1516 = vmatprep.subr.bf16.mxu1 %v1515_v60  ;;  %v188_v23 = vld [vmem:[%s1820_s19] sm:$0xff]  ;;  %v237_v25 = vld [vmem:[%s1825_s23 + $0x168] sm:$0xff]  ;;  %v254_v30 = vld [vmem:[%s1825_s23 + $0x1f0] sm:$0xff]  ;;  %v1493_v32 = vpack.c.bf16 %v205_v21, %v204_v18  ;;  %v1495_v36 = vpack.c.bf16 %v223_v27, %v222_v26 }
  0x2b   : > { %v459_v28 = vrot.slane %v188_v23, %v1878_v14  ;;  %v452_v29 = vcombine.high %v188_v23, %v188_v23  ;;  %v255_v31 = vld [vmem:[%s1825_s23 + $0x1f8] sm:$0xff]  ;;  %v1525_v35 = vpack.c.bf16 %v237_v25, %v236_v22  ;;  %v206_v37 = vld [vmem:[%s1825_s23 + $0x70] sm:$0xff]  ;;  %v272_v43 = vld [vmem:[%s1825_s23 + $0x280] sm:$0xff] }
  0x2c   : > { %1486 = vmatpush3.bf16.msra.mxu0 %v1485_v4  ;;  %v207_v38 = vld [vmem:[%s1825_s23 + $0x78] sm:$0xff]  ;;  %v238_v39 = vld [vmem:[%s1825_s23 + $0x170] sm:$0xff]  ;;  %v1527_v40 = vpack.c.bf16 %v255_v31, %v254_v30  ;;  %v273_v44 = vld [vmem:[%s1825_s23 + $0x288] sm:$0xff] }
  0x2d   : > { %1518 = vmatpush3.bf16.msra.mxu1 %v1517_v5  ;;  %1488 = vmatprep.subr.bf16.mxu0 %v1487_v6  ;;  %v467_v33 = vcombine.high %v459_v28, %v459_v28  ;;  %v466_v34 = vrot.slane %v452_v29, %v1878_v14  ;;  %v239_v41 = vld [vmem:[%s1825_s23 + $0x178] sm:$0xff]  ;;  %v304_v45 = vld [vmem:[%s1825_s23 + $0x380] sm:$0xff]  ;;  %v305_v46 = vld [vmem:[%s1825_s23 + $0x388] sm:$0xff]  ;;  %v1497_v47 = vpack.c.bf16 %v207_v38, %v206_v37 }
  0x2e   : > { %1520 = vmatprep.subr.bf16.mxu1 %v1519_v10  ;;  %v1529_v48 = vpack.c.bf16 %v239_v41, %v238_v39  ;;  %v1531_v49 = vpack.c.bf16 %v273_v44, %v272_v43  ;;  %v256_v50 = vld [vmem:[%s1825_s23 + $0x200] sm:$0xff]  ;;  %v257_v51 = vld [vmem:[%s1825_s23 + $0x208] sm:$0xff]  ;;  %v1563_v53 = vpack.c.bf16 %v305_v46, %v304_v45  ;;  %v274_v55 = vld [vmem:[%s1825_s23 + $0x290] sm:$0xff] }
  0x2f   : > { %600 = vmatprep.mubr.f32.mxu0 %v467_v33  ;;  %v468_v42 = vcombine.high %v466_v34, %v466_v34  ;;  %v288_v52 = vld [vmem:[%s1825_s23 + $0x300] sm:$0xff]  ;;  %v289_v54 = vld [vmem:[%s1825_s23 + $0x308] sm:$0xff]  ;;  %v275_v56 = vld [vmem:[%s1825_s23 + $0x298] sm:$0xff]  ;;  %v1533_v59 = vpack.c.bf16 %v257_v51, %v256_v50 }
  0x30   : > { %1490 = vmatpush3.bf16.msra.mxu0 %v1489_v17  ;;  %v306_v57 = vld [vmem:[%s1825_s23 + $0x390] sm:$0xff]  ;;  %v307_v58 = vld [vmem:[%s1825_s23 + $0x398] sm:$0xff]  ;;  %v1565_v60 = vpack.c.bf16 %v289_v54, %v288_v52  ;;  %v1535_v61 = vpack.c.bf16 %v275_v56, %v274_v55  ;;  %v276_v3 = vld [vmem:[%s1825_s23 + $0x2a0] sm:$0xff] }
  0x31   : > { %1522 = vmatpush3.bf16.msra.mxu1 %v1521_v19  ;;  %1492 = vmatprep.subr.bf16.mxu0 %v1491_v20  ;;  %v258_v62 = vld [vmem:[%s1825_s23 + $0x210] sm:$0xff]  ;;  %v259_v63 = vld [vmem:[%s1825_s23 + $0x218] sm:$0xff]  ;;  %v1567_v1 = vpack.c.bf16 %v307_v58, %v306_v57  ;;  %v277_v4 = vld [vmem:[%s1825_s23 + $0x2a8] sm:$0xff] }
  0x32   : > { %1524 = vmatprep.subr.bf16.mxu1 %v1523_v24  ;;  %670 = vmatprep.mubr.f32.mxu1 %v468_v42  ;;  %v290_v0 = vld [vmem:[%s1825_s23 + $0x310] sm:$0xff]  ;;  %v291_v2 = vld [vmem:[%s1825_s23 + $0x318] sm:$0xff]  ;;  %v308_v5 = vld [vmem:[%s1825_s23 + $0x3a0] sm:$0xff]  ;;  %v1537_v7 = vpack.c.bf16 %v259_v63, %v258_v62  ;;  %v1539_v9 = vpack.c.bf16 %v277_v4, %v276_v3 }
  0x33   : > { %v309_v6 = vld [vmem:[%s1825_s23 + $0x3a8] sm:$0xff]  ;;  %v1569_v8 = vpack.c.bf16 %v291_v2, %v290_v0  ;;  %v260_v10 = vld [vmem:[%s1825_s23 + $0x220] sm:$0xff]  ;;  %v278_v16 = vld [vmem:[%s1825_s23 + $0x2b0] sm:$0xff] }
  0x34   : > { %1494 = vmatpush3.bf16.msra.mxu0 %v1493_v32  ;;  %v261_v11 = vld [vmem:[%s1825_s23 + $0x228] sm:$0xff]  ;;  %v292_v12 = vld [vmem:[%s1825_s23 + $0x320] sm:$0xff]  ;;  %v1571_v13 = vpack.c.bf16 %v309_v6, %v308_v5  ;;  %v279_v17 = vld [vmem:[%s1825_s23 + $0x2b8] sm:$0xff] }
  0x35   : > { %1526 = vmatpush3.bf16.msra.mxu1 %v1525_v35  ;;  %1496 = vmatprep.subr.bf16.mxu0 %v1495_v36  ;;  %v293_v15 = vld [vmem:[%s1825_s23 + $0x328] sm:$0xff]  ;;  %v310_v18 = vld [vmem:[%s1825_s23 + $0x3b0] sm:$0xff]  ;;  %v311_v19 = vld [vmem:[%s1825_s23 + $0x3b8] sm:$0xff]  ;;  %v1541_v20 = vpack.c.bf16 %v261_v11, %v260_v10  ;;  %v1543_v22 = vpack.c.bf16 %v279_v17, %v278_v16 }
  0x36   : > { %1528 = vmatprep.subr.bf16.mxu1 %v1527_v40  ;;  %v1573_v21 = vpack.c.bf16 %v293_v15, %v292_v12  ;;  %v262_v23 = vld [vmem:[%s1825_s23 + $0x230] sm:$0xff]  ;;  %v263_v24 = vld [vmem:[%s1825_s23 + $0x238] sm:$0xff]  ;;  %v1575_v26 = vpack.c.bf16 %v311_v19, %v310_v18  ;;  %v281_v29 = vld [vmem:[%s1825_s23 + $0x2c8] sm:$0xff] }
  0x37   : > { %v294_v25 = vld [vmem:[%s1825_s23 + $0x330] sm:$0xff]  ;;  %v295_v27 = vld [vmem:[%s1825_s23 + $0x338] sm:$0xff]  ;;  %v312_v30 = vld [vmem:[%s1825_s23 + $0x3c0] sm:$0xff]  ;;  %v1545_v33 = vpack.c.bf16 %v263_v24, %v262_v23 }
  0x38   : > { %1498 = vmatpush3.bf16.msra.mxu0 %v1497_v47  ;;  %v313_v31 = vld [vmem:[%s1825_s23 + $0x3c8] sm:$0xff]  ;;  %v1577_v36 = vpack.c.bf16 %v295_v27, %v294_v25  ;;  %v264_v38 = vld [vmem:[%s1825_s23 + $0x240] sm:$0xff]  ;;  %v282_v43 = vld [vmem:[%s1825_s23 + $0x2d0] sm:$0xff] }
  0x39   : > { %1530 = vmatpush3.bf16.msra.mxu1 %v1529_v48  ;;  %1532 = vmatprep.subr.bf16.mxu0 %v1531_v49  ;;  %v189_v32 = vld [vmem:[%s1820_s19 + $0x8] sm:$0xff]  ;;  %v296_v40 = vld [vmem:[%s1825_s23 + $0x340] sm:$0xff]  ;;  %v1579_v41 = vpack.c.bf16 %v313_v31, %v312_v30  ;;  %v283_v44 = vld [vmem:[%s1825_s23 + $0x2d8] sm:$0xff] }
  0x3a   : > { %1564 = vmatprep.subr.bf16.mxu1 %v1563_v53  ;;  %v469_v35 = vcombine.high %v189_v32, %v189_v32  ;;  %v265_v39 = vld [vmem:[%s1825_s23 + $0x248] sm:$0xff]  ;;  %v314_v47 = vld [vmem:[%s1825_s23 + $0x3d0] sm:$0xff]  ;;  %v315_v48 = vld [vmem:[%s1825_s23 + $0x3d8] sm:$0xff]  ;;  %v1551_v52 = vpack.c.bf16 %v283_v44, %v282_v43 }
  0x3b   : > { %601 = vmatmul.mubr.f32.vlgmr.msra.gmra.mrb[0].mxu0 %v459_v28  ;;  %v280_v28 = vld [vmem:[%s1825_s23 + $0x2c0] sm:$0xff]  ;;  %v297_v42 = vld [vmem:[%s1825_s23 + $0x348] sm:$0xff]  ;;  %v1549_v49 = vpack.c.bf16 %v265_v39, %v264_v38  ;;  %v266_v53 = vld [vmem:[%s1825_s23 + $0x250] sm:$0xff]  ;;  %v1583_v56 = vpack.c.bf16 %v315_v48, %v314_v47 }
  0x3c   : > { %671 = vmatmul.mubr.f32.vlgmr.msra.gmra.mrb[0].mxu1 %v466_v34  ;;  %1534 = vmatpush3.bf16.msra.mxu0 %v1533_v59  ;;  %v1935_v34 = vrot.slane %v189_v32, %v1878_v14  ;;  %v1547_v37 = vpack.c.bf16 %v281_v29, %v280_v28  ;;  %v1946_v46 = vrot.slane %v469_v35, %v1878_v14  ;;  %v267_v54 = vld [vmem:[%s1825_s23 + $0x258] sm:$0xff]  ;;  %v298_v55 = vld [vmem:[%s1825_s23 + $0x350] sm:$0xff]  ;;  %v284_v58 = vld [vmem:[%s1825_s23 + $0x2e0] sm:$0xff] }
  0x3d   : > { %1566 = vmatpush3.bf16.msra.mxu1 %v1565_v60  ;;  %1536 = vmatprep.subr.bf16.mxu0 %v1535_v61  ;;  %v1581_v51 = vpack.c.bf16 %v297_v42, %v296_v40  ;;  %v299_v57 = vld [vmem:[%s1825_s23 + $0x358] sm:$0xff]  ;;  %v285_v59 = vld [vmem:[%s1825_s23 + $0x2e8] sm:$0xff]  ;;  %v316_v60 = vld [vmem:[%s1825_s23 + $0x3e0] sm:$0xff]  ;;  %v1553_v62 = vpack.c.bf16 %v267_v54, %v266_v53 }
  0x3e   : > { %1568 = vmatprep.subr.bf16.mxu1 %v1567_v1  ;;  %v484_v45 = vcombine.high %v1935_v34, %v1935_v34  ;;  %v485_v50 = vcombine.high %v1946_v46, %v1946_v46  ;;  %v317_v61 = vld [vmem:[%s1825_s23 + $0x3e8] sm:$0xff]  ;;  %v1585_v63 = vpack.c.bf16 %v299_v57, %v298_v55  ;;  %v1555_v0 = vpack.c.bf16 %v285_v59, %v284_v58  ;;  %v268_v1 = vld [vmem:[%s1825_s23 + $0x260] sm:$0xff]  ;;  %v286_v6 = vld [vmem:[%s1825_s23 + $0x2f0] sm:$0xff] }
  0x3f   : > { %v269_v2 = vld [vmem:[%s1825_s23 + $0x268] sm:$0xff]  ;;  %v300_v3 = vld [vmem:[%s1825_s23 + $0x360] sm:$0xff]  ;;  %v1587_v4 = vpack.c.bf16 %v317_v61, %v316_v60  ;;  %v271_v15 = vld [vmem:[%s1825_s23 + $0x278] sm:$0xff] }
  0x40   : > { %1538 = vmatpush3.bf16.msra.mxu0 %v1537_v7  ;;  %740 = vmatprep.mubr.f32.mxu0 %v484_v45  ;;  %v301_v5 = vld [vmem:[%s1825_s23 + $0x368] sm:$0xff]  ;;  %v287_v7 = vld [vmem:[%s1825_s23 + $0x2f8] sm:$0xff]  ;;  %v1557_v10 = vpack.c.bf16 %v269_v2, %v268_v1  ;;  %v302_v16 = vld [vmem:[%s1825_s23 + $0x370] sm:$0xff] }
  0x41   : > { %1570 = vmatpush3.bf16.msra.mxu1 %v1569_v8  ;;  %1540 = vmatprep.subr.bf16.mxu0 %v1539_v9  ;;  %v318_v8 = vld [vmem:[%s1825_s23 + $0x3f0] sm:$0xff]  ;;  %v319_v9 = vld [vmem:[%s1825_s23 + $0x3f8] sm:$0xff]  ;;  %v1589_v11 = vpack.c.bf16 %v301_v5, %v300_v3  ;;  %v1559_v12 = vpack.c.bf16 %v287_v7, %v286_v6  ;;  %v336_v19 = vld [vmem:[%s1825_s23 + $0x480] sm:$0xff] }
  0x42   : > { %1572 = vmatprep.subr.bf16.mxu1 %v1571_v13  ;;  %810 = vmatprep.mubr.f32.mxu1 %v485_v50  ;;  %v270_v13 = vld [vmem:[%s1825_s23 + $0x270] sm:$0xff]  ;;  %v1591_v17 = vpack.c.bf16 %v319_v9, %v318_v8  ;;  %v303_v18 = vld [vmem:[%s1825_s23 + $0x378] sm:$0xff]  ;;  %v320_v24 = vld [vmem:[%s1825_s23 + $0x400] sm:$0xff] }
  0x43   : > { %v1561_v23 = vpack.c.bf16 %v271_v15, %v270_v13  ;;  %v1593_v25 = vpack.c.bf16 %v303_v18, %v302_v16  ;;  %v321_v27 = vld [vmem:[%s1825_s23 + $0x408] sm:$0xff]  ;;  %v352_v28 = vld [vmem:[%s1825_s23 + $0x500] sm:$0xff]  ;;  %v338_v31 = vld [vmem:[%s1825_s23 + $0x490] sm:$0xff] }
  0x44   : > { %1542 = vmatpush3.bf16.msra.mxu0 %v1541_v20  ;;  %v337_v20 = vld [vmem:[%s1825_s23 + $0x488] sm:$0xff]  ;;  %v339_v32 = vld [vmem:[%s1825_s23 + $0x498] sm:$0xff]  ;;  %v190_v38 = vld [vmem:[%s1820_s19 + $0x10] sm:$0xff] }
  0x45   : > { %1574 = vmatpush3.bf16.msra.mxu1 %v1573_v21  ;;  %1544 = vmatprep.subr.bf16.mxu0 %v1543_v22  ;;  %v368_v21 = vld [vmem:[%s1825_s23 + $0x580] sm:$0xff]  ;;  %v369_v22 = vld [vmem:[%s1825_s23 + $0x588] sm:$0xff]  ;;  %v371_v35 = vld [vmem:[%s1825_s23 + $0x598] sm:$0xff]  ;;  %v1599_v39 = vpack.c.bf16 %v339_v32, %v338_v31  ;;  %v1989_v43 = vrot.slane %v190_v38, %v1878_v14  ;;  %v486_v44 = vcombine.high %v190_v38, %v190_v38 }
  0x46   : > { %1576 = vmatprep.subr.bf16.mxu1 %v1575_v26  ;;  %v1595_v26 = vpack.c.bf16 %v337_v20, %v336_v19  ;;  %v353_v29 = vld [vmem:[%s1825_s23 + $0x508] sm:$0xff]  ;;  %v1627_v30 = vpack.c.bf16 %v369_v22, %v368_v21  ;;  %v322_v40 = vld [vmem:[%s1825_s23 + $0x410] sm:$0xff]  ;;  %v355_v47 = vld [vmem:[%s1825_s23 + $0x518] sm:$0xff] }
  0x47   : > { %v354_v42 = vld [vmem:[%s1825_s23 + $0x510] sm:$0xff]  ;;  %v340_v48 = vld [vmem:[%s1825_s23 + $0x4a0] sm:$0xff]  ;;  %v2000_v53 = vrot.slane %v486_v44, %v1878_v14  ;;  %v325_v57 = vld [vmem:[%s1825_s23 + $0x428] sm:$0xff] }
  0x48   : > { %1546 = vmatpush3.bf16.msra.mxu0 %v1545_v33  ;;  %v370_v33 = vld [vmem:[%s1825_s23 + $0x590] sm:$0xff]  ;;  %v372_v50 = vld [vmem:[%s1825_s23 + $0x5a0] sm:$0xff]  ;;  %v357_v61 = vld [vmem:[%s1825_s23 + $0x528] sm:$0xff] }
  0x49   : > { %1578 = vmatpush3.bf16.msra.mxu1 %v1577_v36  ;;  %1548 = vmatprep.subr.bf16.mxu0 %v1547_v37  ;;  %v1597_v36 = vpack.c.bf16 %v321_v27, %v320_v24  ;;  %v1629_v37 = vpack.c.bf16 %v353_v29, %v352_v28  ;;  %v1631_v45 = vpack.c.bf16 %v371_v35, %v370_v33  ;;  %v356_v58 = vld [vmem:[%s1825_s23 + $0x520] sm:$0xff]  ;;  %v327_v5 = vld [vmem:[%s1825_s23 + $0x438] sm:$0xff]  ;;  %v358_v6 = vld [vmem:[%s1825_s23 + $0x530] sm:$0xff] }
  0x4a   : > { %1580 = vmatprep.subr.bf16.mxu1 %v1579_v41  ;;  %v323_v41 = vld [vmem:[%s1825_s23 + $0x418] sm:$0xff]  ;;  %v502_v59 = vcombine.high %v2000_v53, %v2000_v53  ;;  %v1637_v2 = vpack.c.bf16 %v357_v61, %v356_v58  ;;  %v344_v9 = vld [vmem:[%s1825_s23 + $0x4c0] sm:$0xff]  ;;  %v329_v18 = vld [vmem:[%s1825_s23 + $0x448] sm:$0xff] }
  0x4b   : > { %v1601_v54 = vpack.c.bf16 %v323_v41, %v322_v40  ;;  %v359_v8 = vld [vmem:[%s1825_s23 + $0x538] sm:$0xff]  ;;  %v360_v19 = vld [vmem:[%s1825_s23 + $0x540] sm:$0xff]  ;;  %v361_v21 = vld [vmem:[%s1825_s23 + $0x548] sm:$0xff] }
  0x4c   : > { %1550 = vmatpush3.bf16.msra.mxu0 %v1549_v49  ;;  %v341_v49 = vld [vmem:[%s1825_s23 + $0x4a8] sm:$0xff]  ;;  %v1641_v15 = vpack.c.bf16 %v359_v8, %v358_v6  ;;  %v346_v22 = vld [vmem:[%s1825_s23 + $0x4d0] sm:$0xff]  ;;  %v1645_v27 = vpack.c.bf16 %v361_v21, %v360_v19  ;;  %v363_v33 = vld [vmem:[%s1825_s23 + $0x558] sm:$0xff] }
  0x4d   : > { %1582 = vmatpush3.bf16.msra.mxu1 %v1581_v51  ;;  %1552 = vmatprep.subr.bf16.mxu0 %v1551_v52  ;;  %v373_v51 = vld [vmem:[%s1825_s23 + $0x5a8] sm:$0xff]  ;;  %v501_v52 = vcombine.high %v1989_v43, %v1989_v43  ;;  %v1603_v55 = vpack.c.bf16 %v341_v49, %v340_v48  ;;  %v378_v24 = vld [vmem:[%s1825_s23 + $0x5d0] sm:$0xff]  ;;  %v348_v35 = vld [vmem:[%s1825_s23 + $0x4e0] sm:$0xff] }
  0x4e   : > { %1584 = vmatprep.subr.bf16.mxu1 %v1583_v56  ;;  %v324_v56 = vld [vmem:[%s1825_s23 + $0x420] sm:$0xff]  ;;  %v1635_v60 = vpack.c.bf16 %v373_v51, %v372_v50  ;;  %v330_v29 = vld [vmem:[%s1825_s23 + $0x450] sm:$0xff]  ;;  %v381_v38 = vld [vmem:[%s1825_s23 + $0x5e8] sm:$0xff] }
  0x4f   : > { %v1605_v1 = vpack.c.bf16 %v325_v57, %v324_v56  ;;  %v362_v31 = vld [vmem:[%s1825_s23 + $0x550] sm:$0xff]  ;;  %v333_v44 = vld [vmem:[%s1825_s23 + $0x468] sm:$0xff]  ;;  %v351_v50 = vld [vmem:[%s1825_s23 + $0x4f8] sm:$0xff] }
  0x50   : > { %1554 = vmatpush3.bf16.msra.mxu0 %v1553_v62  ;;  %v343_v62 = vld [vmem:[%s1825_s23 + $0x4b8] sm:$0xff]  ;;  %v1649_v40 = vpack.c.bf16 %v363_v33, %v362_v31  ;;  %v365_v48 = vld [vmem:[%s1825_s23 + $0x568] sm:$0xff]  ;;  %v350_v49 = vld [vmem:[%s1825_s23 + $0x4f0] sm:$0xff] }
  0x51   : > { %1586 = vmatpush3.bf16.msra.mxu1 %v1585_v63  ;;  %1556 = vmatprep.subr.bf16.mxu0 %v1555_v0  ;;  %v374_v63 = vld [vmem:[%s1825_s23 + $0x5b0] sm:$0xff]  ;;  %v375_v0 = vld [vmem:[%s1825_s23 + $0x5b8] sm:$0xff]  ;;  %v1623_v56 = vpack.c.bf16 %v351_v50, %v350_v49  ;;  %v385_v6 = vld [vmem:[%s1825_s23 + $0x608] sm:$0xff] }
  0x52   : > { %1588 = vmatprep.subr.bf16.mxu1 %v1587_v4  ;;  %v326_v4 = vld [vmem:[%s1825_s23 + $0x430] sm:$0xff]  ;;  %v1639_v7 = vpack.c.bf16 %v375_v0, %v374_v63  ;;  %v335_v58 = vld [vmem:[%s1825_s23 + $0x478] sm:$0xff]  ;;  %v432_v63 = vld [vmem:[%s1825_s23 + $0x780] sm:$0xff] }
  0x53   : > { %v1609_v13 = vpack.c.bf16 %v327_v5, %v326_v4  ;;  %v382_v51 = vld [vmem:[%s1825_s23 + $0x5f0] sm:$0xff]  ;;  %v367_v61 = vld [vmem:[%s1825_s23 + $0x578] sm:$0xff]  ;;  %v433_v0 = vld [vmem:[%s1825_s23 + $0x788] sm:$0xff] }
  0x54   : > { %1558 = vmatpush3.bf16.msra.mxu0 %v1557_v10  ;;  %v345_v10 = vld [vmem:[%s1825_s23 + $0x4c8] sm:$0xff]  ;;  %v334_v57 = vld [vmem:[%s1825_s23 + $0x470] sm:$0xff]  ;;  %v384_v5 = vld [vmem:[%s1825_s23 + $0x600] sm:$0xff]  ;;  %v1691_v8 = vpack.c.bf16 %v433_v0, %v432_v63 }
  0x55   : > { %1590 = vmatpush3.bf16.msra.mxu1 %v1589_v11  ;;  %1560 = vmatprep.subr.bf16.mxu0 %v1559_v12  ;;  %v376_v11 = vld [vmem:[%s1825_s23 + $0x5c0] sm:$0xff]  ;;  %v377_v12 = vld [vmem:[%s1825_s23 + $0x5c8] sm:$0xff]  ;;  %v1611_v16 = vpack.c.bf16 %v345_v10, %v344_v9  ;;  %v402_v10 = vld [vmem:[%s1825_s23 + $0x690] sm:$0xff] }
  0x56   : > { %1592 = vmatprep.subr.bf16.mxu1 %v1591_v17  ;;  %v328_v17 = vld [vmem:[%s1825_s23 + $0x440] sm:$0xff]  ;;  %v1643_v20 = vpack.c.bf16 %v377_v12, %v376_v11  ;;  %v417_v9 = vld [vmem:[%s1825_s23 + $0x708] sm:$0xff]  ;;  %v403_v11 = vld [vmem:[%s1825_s23 + $0x698] sm:$0xff] }
  0x57   : > { %v1663_v19 = vpack.c.bf16 %v403_v11, %v402_v10  ;;  %v387_v21 = vld [vmem:[%s1825_s23 + $0x618] sm:$0xff]  ;;  %v388_v33 = vld [vmem:[%s1825_s23 + $0x620] sm:$0xff]  ;;  %v442_v0 = vld [vmem:[%s1825_s23 + $0x7d0] sm:$0xff] }
  0x58   : > { %1562 = vmatpush3.bf16.msra.mxu0 %v1561_v23  ;;  %v347_v23 = vld [vmem:[%s1825_s23 + $0x4d8] sm:$0xff]  ;;  %v412_v10 = vld [vmem:[%s1825_s23 + $0x6e0] sm:$0xff]  ;;  %v413_v11 = vld [vmem:[%s1825_s23 + $0x6e8] sm:$0xff] }
  0x59   : > { %1594 = vmatpush3.bf16.msra.mxu1 %v1593_v25  ;;  %1596 = vmatprep.subr.bf16.mxu0 %v1595_v26  ;;  %v379_v25 = vld [vmem:[%s1825_s23 + $0x5d8] sm:$0xff]  ;;  %v1613_v26 = vpack.c.bf16 %v329_v18, %v328_v17  ;;  %v1615_v28 = vpack.c.bf16 %v347_v23, %v346_v22  ;;  %v1661_v17 = vpack.c.bf16 %v385_v6, %v384_v5  ;;  %v418_v22 = vld [vmem:[%s1825_s23 + $0x710] sm:$0xff] }
  0x5a   : > { %1628 = vmatprep.subr.bf16.mxu1 %v1627_v30  ;;  %v331_v30 = vld [vmem:[%s1825_s23 + $0x458] sm:$0xff]  ;;  %v1647_v32 = vpack.c.bf16 %v379_v25, %v378_v24  ;;  %v404_v25 = vld [vmem:[%s1825_s23 + $0x6a0] sm:$0xff]  ;;  %v394_v5 = vld [vmem:[%s1825_s23 + $0x650] sm:$0xff] }
  0x5b   : > { %741 = vmatmul.mubr.f32.vlgmr.msra.gmra.mrb[2].mxu0 %v1935_v34  ;;  %v1633_v34 = vpack.c.bf16 %v355_v47, %v354_v42  ;;  %v332_v42 = vld [vmem:[%s1825_s23 + $0x460] sm:$0xff]  ;;  %v419_v24 = vld [vmem:[%s1825_s23 + $0x718] sm:$0xff] }
  0x5c   : > { %1598 = vmatpush3.bf16.msra.mxu0 %v1597_v36  ;;  %811 = vmatmul.mubr.f32.vlgmr.msra.gmra.mrb[2].mxu1 %v1946_v46  ;;  %v342_v46 = vld [vmem:[%s1825_s23 + $0x4b0] sm:$0xff]  ;;  %v349_v36 = vld [vmem:[%s1825_s23 + $0x4e8] sm:$0xff]  ;;  %v1697_v31 = vpack.c.bf16 %v419_v24, %v418_v22  ;;  %v423_v50 = vld [vmem:[%s1825_s23 + $0x738] sm:$0xff] }
  0x5d   : > { %1630 = vmatpush3.bf16.msra.mxu1 %v1629_v37  ;;  %1600 = vmatprep.subr.bf16.mxu0 %v1599_v39  ;;  %v1607_v3 = vpack.c.bf16 %v343_v62, %v342_v46  ;;  %v380_v37 = vld [vmem:[%s1825_s23 + $0x5e0] sm:$0xff]  ;;  %v1617_v39 = vpack.c.bf16 %v331_v30, %v330_v29  ;;  %v1619_v41 = vpack.c.bf16 %v349_v36, %v348_v35  ;;  %v401_v62 = vld [vmem:[%s1825_s23 + $0x688] sm:$0xff]  ;;  %v411_v63 = vld [vmem:[%s1825_s23 + $0x6d8] sm:$0xff] }
  0x5e   : > { %1632 = vmatprep.subr.bf16.mxu1 %v1631_v45  ;;  %880 = vmatprep.mubr.f32.mxu0 %v501_v52  ;;  %v364_v45 = vld [vmem:[%s1825_s23 + $0x560] sm:$0xff]  ;;  %v1651_v47 = vpack.c.bf16 %v381_v38, %v380_v37  ;;  %v383_v52 = vld [vmem:[%s1825_s23 + $0x5f8] sm:$0xff]  ;;  %v421_v37 = vld [vmem:[%s1825_s23 + $0x728] sm:$0xff] }
  0x5f   : > { %950 = vmatprep.mubr.f32.mxu1 %v502_v59  ;;  %v366_v59 = vld [vmem:[%s1825_s23 + $0x570] sm:$0xff]  ;;  %v400_v46 = vld [vmem:[%s1825_s23 + $0x680] sm:$0xff]  ;;  %v395_v6 = vld [vmem:[%s1825_s23 + $0x658] sm:$0xff] }
  0x60   : > { %1602 = vmatpush3.bf16.msra.mxu0 %v1601_v54  ;;  %v1621_v54 = vpack.c.bf16 %v333_v44, %v332_v42  ;;  %v1659_v4 = vpack.c.bf16 %v401_v62, %v400_v46  ;;  %v420_v35 = vld [vmem:[%s1825_s23 + $0x720] sm:$0xff]  ;;  %v406_v38 = vld [vmem:[%s1825_s23 + $0x6b0] sm:$0xff]  ;;  %v425_v46 = vld [vmem:[%s1825_s23 + $0x748] sm:$0xff] }
  0x61   : > { %1634 = vmatpush3.bf16.msra.mxu1 %v1633_v34  ;;  %1604 = vmatprep.subr.bf16.mxu0 %v1603_v55  ;;  %v191_v34 = vld [vmem:[%s1820_s19 + $0x18] sm:$0xff]  ;;  %v1653_v55 = vpack.c.bf16 %v365_v48, %v364_v45  ;;  %v1701_v42 = vpack.c.bf16 %v421_v37, %v420_v35  ;;  %v390_v45 = vld [vmem:[%s1825_s23 + $0x630] sm:$0xff]  ;;  %v428_v22 = vld [vmem:[%s1825_s23 + $0x760] sm:$0xff] }
  0x62   : > { %1636 = vmatprep.subr.bf16.mxu1 %v1635_v60  ;;  %v1655_v60 = vpack.c.bf16 %v383_v52, %v382_v51  ;;  %v2061_v12 = vrot.slane %v191_v34, %v1878_v14  ;;  %v422_v48 = vld [vmem:[%s1825_s23 + $0x730] sm:$0xff]  ;;  %v408_v51 = vld [vmem:[%s1825_s23 + $0x6c0] sm:$0xff]  ;;  %v409_v52 = vld [vmem:[%s1825_s23 + $0x6c8] sm:$0xff] }
  0x63   : > { %v410_v62 = vld [vmem:[%s1825_s23 + $0x6d0] sm:$0xff]  ;;  %v429_v24 = vld [vmem:[%s1825_s23 + $0x768] sm:$0xff]  ;;  %v431_v35 = vld [vmem:[%s1825_s23 + $0x778] sm:$0xff] }
  0x64   : > { %1606 = vmatpush3.bf16.msra.mxu0 %v1605_v1  ;;  %v503_v1 = vcombine.high %v191_v34, %v191_v34  ;;  %v441_v34 = vld [vmem:[%s1825_s23 + $0x7c8] sm:$0xff] }
  0x65   : > { %1638 = vmatpush3.bf16.msra.mxu1 %v1637_v2  ;;  %1608 = vmatprep.subr.bf16.mxu0 %v1607_v3  ;;  %v1625_v2 = vpack.c.bf16 %v335_v58, %v334_v57  ;;  %v1657_v3 = vpack.c.bf16 %v367_v61, %v366_v59  ;;  %v1675_v57 = vpack.c.bf16 %v409_v52, %v408_v51  ;;  %v392_v58 = vld [vmem:[%s1825_s23 + $0x640] sm:$0xff]  ;;  %v393_v59 = vld [vmem:[%s1825_s23 + $0x648] sm:$0xff] }
  0x66   : > { %1640 = vmatprep.subr.bf16.mxu1 %v1639_v7  ;;  %v416_v7 = vld [vmem:[%s1825_s23 + $0x700] sm:$0xff] }
  0x67   : > { %v1693_v18 = vpack.c.bf16 %v417_v9, %v416_v7  ;;  %v426_v7 = vld [vmem:[%s1825_s23 + $0x750] sm:$0xff]  ;;  %v427_v9 = vld [vmem:[%s1825_s23 + $0x758] sm:$0xff] }
  0x68   : > { %1610 = vmatpush3.bf16.msra.mxu0 %v1609_v13  ;;  %v434_v13 = vld [vmem:[%s1825_s23 + $0x790] sm:$0xff] }
  0x69   : > { %1642 = vmatpush3.bf16.msra.mxu1 %v1641_v15  ;;  %1612 = vmatprep.subr.bf16.mxu0 %v1611_v16  ;;  %v435_v15 = vld [vmem:[%s1825_s23 + $0x798] sm:$0xff]  ;;  %v2066_v16 = vrot.slane %v503_v1, %v1878_v14  ;;  %v405_v14 = vld [vmem:[%s1825_s23 + $0x6a8] sm:$0xff] }
  0x6a   : > { %1644 = vmatprep.subr.bf16.mxu1 %v1643_v20  ;;  %v386_v20 = vld [vmem:[%s1825_s23 + $0x610] sm:$0xff]  ;;  %v1695_v23 = vpack.c.bf16 %v435_v15, %v434_v13  ;;  %v443_v1 = vld [vmem:[%s1825_s23 + $0x7d8] sm:$0xff]  ;;  %v444_v13 = vld [vmem:[%s1825_s23 + $0x7e0] sm:$0xff] }
  0x6b   : > { %v519_v29 = vcombine.high %v2066_v16, %v2066_v16  ;;  %v1665_v30 = vpack.c.bf16 %v387_v21, %v386_v20  ;;  %v445_v15 = vld [vmem:[%s1825_s23 + $0x7e8] sm:$0xff]  ;;  %v396_v20 = vld [vmem:[%s1825_s23 + $0x660] sm:$0xff] }
  0x6c   : > { %1614 = vmatpush3.bf16.msra.mxu0 %v1613_v26  ;;  %v518_v26 = vcombine.high %v2061_v12, %v2061_v12  ;;  %v397_v21 = vld [vmem:[%s1825_s23 + $0x668] sm:$0xff] }
  0x6d   : > { %1646 = vmatpush3.bf16.msra.mxu1 %v1645_v27  ;;  %1616 = vmatprep.subr.bf16.mxu0 %v1615_v28  ;;  %v436_v27 = vld [vmem:[%s1825_s23 + $0x7a0] sm:$0xff]  ;;  %v437_v28 = vld [vmem:[%s1825_s23 + $0x7a8] sm:$0xff] }
  0x6e   : > { %1648 = vmatprep.subr.bf16.mxu1 %v1647_v32  ;;  %v1667_v32 = vpack.c.bf16 %v405_v14, %v404_v25  ;;  %v1699_v36 = vpack.c.bf16 %v437_v28, %v436_v27  ;;  %v414_v25 = vld [vmem:[%s1825_s23 + $0x6f0] sm:$0xff]  ;;  %v415_v14 = vld [vmem:[%s1825_s23 + $0x6f8] sm:$0xff]  ;;  %v1685_v28 = vpack.c.bf16 %v397_v21, %v396_v20 }
  0x6f   : > { %v447_v27 = vld [vmem:[%s1825_s23 + $0x7f8] sm:$0xff] }
  0x70   : > { %1618 = vmatpush3.bf16.msra.mxu0 %v1617_v39  ;;  %v407_v39 = vld [vmem:[%s1825_s23 + $0x6b8] sm:$0xff] }
  0x71   : > { %1650 = vmatpush3.bf16.msra.mxu1 %v1649_v40  ;;  %1620 = vmatprep.subr.bf16.mxu0 %v1619_v41  ;;  %v439_v40 = vld [vmem:[%s1825_s23 + $0x7b8] sm:$0xff]  ;;  %v1671_v44 = vpack.c.bf16 %v407_v39, %v406_v38 }
  0x72   : > { %1652 = vmatprep.subr.bf16.mxu1 %v1651_v47  ;;  %v391_v47 = vld [vmem:[%s1825_s23 + $0x638] sm:$0xff] }
  0x74   : > { %1622 = vmatpush3.bf16.msra.mxu0 %v1621_v54  ;;  %v440_v54 = vld [vmem:[%s1825_s23 + $0x7c0] sm:$0xff] }
  0x75   : > { %1654 = vmatpush3.bf16.msra.mxu1 %v1653_v55  ;;  %1624 = vmatprep.subr.bf16.mxu0 %v1623_v56  ;;  %v1673_v55 = vpack.c.bf16 %v391_v47, %v390_v45  ;;  %v1705_v56 = vpack.c.bf16 %v423_v50, %v422_v48  ;;  %v1707_v61 = vpack.c.bf16 %v441_v34, %v440_v54 }
  0x76   : > { %1656 = vmatprep.subr.bf16.mxu1 %v1655_v60  ;;  %v424_v60 = vld [vmem:[%s1825_s23 + $0x740] sm:$0xff] }
  0x78   : > { %1626 = vmatpush3.bf16.msra.mxu0 %v1625_v2  ;;  %v1677_v2 = vpack.c.bf16 %v393_v59, %v392_v58 }
  0x79   : > { %1658 = vmatpush3.bf16.msra.mxu1 %v1657_v3  ;;  %1660 = vmatprep.subr.bf16.mxu0 %v1659_v4  ;;  %v1709_v3 = vpack.c.bf16 %v425_v46, %v424_v60  ;;  %v1679_v4 = vpack.c.bf16 %v411_v63, %v410_v62 }
  0x7a   : > { %1692 = vmatprep.subr.bf16.mxu1 %v1691_v8  ;;  %v1711_v8 = vpack.c.bf16 %v443_v1, %v442_v0 }
  0x7b   : > { %881 = vmatmul.mubr.f32.vlgmr.msra.gmra.mrb[4].mxu0 %v1989_v43  ;;  %v389_v43 = vld [vmem:[%s1825_s23 + $0x628] sm:$0xff] }
  0x7c   : > { %1662 = vmatpush3.bf16.msra.mxu0 %v1661_v17  ;;  %951 = vmatmul.mubr.f32.vlgmr.msra.gmra.mrb[4].mxu1 %v2000_v53  ;;  %v438_v53 = vld [vmem:[%s1825_s23 + $0x7b0] sm:$0xff]  ;;  %v1669_v41 = vpack.c.bf16 %v389_v43, %v388_v33  ;;  %v1681_v17 = vpack.c.bf16 %v395_v6, %v394_v5  ;;  %v1182_v6 = vld [vmem:[%s2160_s2] ss:$0 sm:$0xff] (!%p1181_p6) }
  0x7d   : > { %1694 = vmatpush3.bf16.msra.mxu1 %v1693_v18  ;;  %1664 = vmatprep.subr.bf16.mxu0 %v1663_v19  ;;  %v1703_v49 = vpack.c.bf16 %v439_v40, %v438_v53  ;;  %v1713_v18 = vpack.c.bf16 %v427_v9, %v426_v7  ;;  %v1683_v19 = vpack.c.bf16 %v413_v11, %v412_v10  ;;  %v430_v43 = vld [vmem:[%s1825_s23 + $0x770] sm:$0xff] }
  0x7e   : > { %1696 = vmatprep.subr.bf16.mxu1 %v1695_v23  ;;  %1020 = vmatprep.mubr.f32.mxu0 %v518_v26  ;;  %v1715_v23 = vpack.c.bf16 %v445_v15, %v444_v13  ;;  %v446_v26 = vld [vmem:[%s1825_s23 + $0x7f0] sm:$0xff]  ;;  %v1721_v37 = vpack.c.bf16 %v431_v35, %v430_v43 }
  0x7f   : > { %1090 = vmatprep.mubr.f32.mxu1 %v519_v29  ;;  %v1717_v29 = vpack.c.bf16 %v429_v24, %v428_v22  ;;  %v1719_v33 = vpack.c.bf16 %v447_v27, %v446_v26 }
  0x80   : > { %1666 = vmatpush3.bf16.msra.mxu0 %v1665_v30  ;;  %v1687_v30 = vpack.c.bf16 %v415_v14, %v414_v25 }
  0x81   : > { %1698 = vmatpush3.bf16.msra.mxu1 %v1697_v31  ;;  %1668 = vmatprep.subr.bf16.mxu0 %v1667_v32  ;;  %v398_v31 = vld [vmem:[%s1825_s23 + $0x670] sm:$0xff]  ;;  %v399_v32 = vld [vmem:[%s1825_s23 + $0x678] sm:$0xff] }
  0x82   : > { %1700 = vmatprep.subr.bf16.mxu1 %v1699_v36  ;;  %v1689_v36 = vpack.c.bf16 %v399_v32, %v398_v31 }
  0x84   : > { %1670 = vmatpush3.bf16.msra.mxu0 %v1669_v41 }
  0x85   : > { %1702 = vmatpush3.bf16.msra.mxu1 %v1701_v42  ;;  %1672 = vmatprep.subr.bf16.mxu0 %v1671_v44 }
  0x86   : > { %1704 = vmatprep.subr.bf16.mxu1 %v1703_v49 }
  0x88   : > { %1674 = vmatpush3.bf16.msra.mxu0 %v1673_v55 }
  0x89   : > { %1706 = vmatpush3.bf16.msra.mxu1 %v1705_v56  ;;  %1676 = vmatprep.subr.bf16.mxu0 %v1675_v57 }
  0x8a   : > { %1708 = vmatprep.subr.bf16.mxu1 %v1707_v61 }
  0x8c   : > { %1678 = vmatpush3.bf16.msra.mxu0 %v1677_v2  ;;  %v187_v2 = vld [vmem:[#allocation2] sm:$0x3] }
  0x8d   : > { %1710 = vmatpush3.bf16.msra.mxu1 %v1709_v3  ;;  %1680 = vmatprep.subr.bf16.mxu0 %v1679_v4 }
  0x8e   : > { %1712 = vmatprep.subr.bf16.mxu1 %v1711_v8 }
  0x90   : > { %1682 = vmatpush3.bf16.msra.mxu0 %v1681_v17 }
  0x91   : > { %1714 = vmatpush3.bf16.msra.mxu1 %v1713_v18  ;;  %1684 = vmatprep.subr.bf16.mxu0 %v1683_v19 }
  0x92   : > { %1716 = vmatprep.subr.bf16.mxu1 %v1715_v23 }
  0x94   : > { %1686 = vmatpush3.bf16.msra.mxu0 %v1685_v28 }
  0x95   : > { %1718 = vmatpush3.bf16.msra.mxu1 %v1717_v29  ;;  %1688 = vmatprep.subr.bf16.mxu0 %v1687_v30 }
  0x96   : > { %1720 = vmatprep.subr.bf16.mxu1 %v1719_v33 }
  0x98   : > { %1690 = vmatpush3.bf16.msra.mxu0 %v1689_v36 }
  0x99   : > { %1722 = vmatpush3.bf16.msra.mxu1 %v1721_v37 }
  0x9b   : > { %1021 = vmatmul.mubr.f32.vlgmr.msra.gmra.mrb[6].mxu0 %v2061_v12 }
  0x9c   : > { %1091 = vmatmul.mubr.f32.vlgmr.msra.gmra.mrb[6].mxu1 %v2066_v16 }
 0x10e   : > { %v1219_v38 = vpop.f32.mrb[0].mxu0 }
 0x10f   : > { %v1254_v39 = vpop.f32.mrb[0].mxu1  ;;  %v1220_v53 = vpop.f32.mrb[1].mxu0 }
 0x110   : > { %v1221_v40 = vadd.f32 %v1220_v53, %v1219_v38  ;;  %v1255_v41 = vpop.f32.mrb[1].mxu1 }
 0x111   : > { %v1256_v42 = vadd.f32 %v1255_v41, %v1254_v39 }
 0x113   : > { %v673_v44 = vadd.f32 %v1256_v42, %v1221_v40 }
 0x12e   : > { %v1289_v45 = vpop.f32.mrb[2].mxu0 }
 0x12f   : > { %v1290_v47 = vpop.f32.mrb[3].mxu0  ;;  %v1324_v48 = vpop.f32.mrb[2].mxu1 }
 0x130   : > { %v1291_v49 = vadd.f32 %v1290_v47, %v1289_v45  ;;  %v1325_v50 = vpop.f32.mrb[3].mxu1 }
 0x131   : > { %v1326_v51 = vadd.f32 %v1325_v50, %v1324_v48 }
 0x132   : > { %v743_v52 = vadd.f32 %v1291_v49, %v673_v44 }
 0x134   : > { %v813_v54 = vadd.f32 %v1326_v51, %v743_v52 }
 0x14e   : > { %v1359_v34 = vpop.f32.mrb[4].mxu0 }
 0x14f   : > { %v1360_v55 = vpop.f32.mrb[5].mxu0  ;;  %v1394_v12 = vpop.f32.mrb[4].mxu1 }
 0x150   : > { %v1361_v56 = vadd.f32 %v1360_v55, %v1359_v34  ;;  %v1395_v16 = vpop.f32.mrb[5].mxu1 }
 0x151   : > { %v1396_v57 = vadd.f32 %v1395_v16, %v1394_v12 }
 0x152   : > { %v883_v58 = vadd.f32 %v1361_v56, %v813_v54 }
 0x154   : > { %v953_v59 = vadd.f32 %v1396_v57, %v883_v58 }
 0x16e   : > { %v1429_v60 = vpop.f32.mrb[6].mxu0 }
 0x16f   : > { %v1430_v61 = vpop.f32.mrb[7].mxu0  ;;  %v1464_v46 = vpop.f32.mrb[6].mxu1 }
 0x170   : > { %v1431_v62 = vadd.f32 %v1430_v61, %v1429_v60  ;;  %v1465_v63 = vpop.f32.mrb[7].mxu1 }
 0x171   : > { %v1466_v0 = vadd.f32 %v1465_v63, %v1464_v46 }
 0x172   : > { %v1023_v1 = vadd.f32 %v1431_v62, %v953_v59  ;;  %1102 = sbr.rel (%p1181_p6) target bundleno = 389 (0x185), region = 40 }
 0x174   : > { %v1093_v3 = vadd.f32 %v1466_v0, %v1023_v1 }
 0x176   : > { %v1096_v4 = vadd.f32 %v1093_v3, %v187_v2 }
 0x178   : > { %1098 = vst.msk [vmem:[#allocation2] sm:$0x3] %vm1097_vm1, %v1096_v4 }
 0x17f   : > { %v1103_v5 = vld [vmem:[#allocation2] sm:$0x3] }
 0x180   : > { %v1104_v7 = vmul.f32 0.015625, %v1103_v5 }
 0x182   : > { %v1112_v8 = vadd.f32 %v1182_v6, %v1104_v7 }
 0x184   : > { %1113 = vst.msk [vmem:[#allocation3] sm:$0x3] %vm1097_vm1, %v1112_v8 }
 0x185 PF: > { %p1727_p7 = scmp.eq.s32.totalorder %s1811_s13, 1  ;;  %s1784_s26 = smov [#allocation3]  }
 0x186   : > { %s1121_s27 = sshll.u32 %s1784_s26, 4  ;;  %s1122_s27 = int_to_ptr.vmem [resolvable:$true] %s1121_s27 }
 0x187   : > { %s1744_s28 = scalar_lea.vmem %s1122_s27, 32  ;;  %p1751_p11 = scmp.lt.s32.totalorder %s1122_s27, %s1122_s27 }
 0x188   : > { %p1745_p8 = scmp.ne.s32.totalorder %s1122_s27, %s1744_s28  ;;  %p1752_p12 = scmp.lt.s32.totalorder %s1744_s28, %s1744_s28 }
 0x18a   : > { %p1746_p9 = pnand %p1745_p8, %p1727_p7  ;;  %p1753_p13 = por %p1752_p12, %p1751_p11 }
 0x18c   : > { %p1747_p10 = pneg %p1746_p9 }
 0x18e   : > { %p1754_p0 = pnand %p1753_p13, %p1747_p10 }
 0x190   : > { %1757 = shalt.err (!%p1754_p0)
}
 0x191   : > { %s1758_s4 = scalar_lea.hbm %s2161_s3, 32 }
 0x192   : > { %p1759_p1 = scmp.ne.s32.totalorder %s2161_s3, %s1758_s4  ;;  %p1764_p4 = scmp.lt.u32.totalorder %s1758_s4, %s2161_s3 }
 0x194   : > { %p1760_p2 = pnand %p1759_p1, %p1727_p7 }
 0x196   : > { %p1761_p3 = pneg %p1760_p2 }
 0x198   : > { %p1766_p5 = pnand %p1764_p4, %p1761_p3 }
 0x19a   : > { %1769 = shalt.err (!%p1766_p5)
}
 0x19b   : > { %1724 = dma.vmem_to_hbm [thread:$0]  (%p1727_p7), %s1122_s27, 32, %s2161_s3, [#allocation4]  }
 0x19c   : > { %1775 = dma.done.wait (%p1727_p7), [#allocation4], 32  }
 0x19d   : > { %1777 = vsyncadd (%p1727_p7), [#allocation4], 4294967264 }
 0x19e PF: > { %s14_s12 = sadd.s32 1, %s1780_s12  }
 0x19f   : > { %p11_p6 = scmp.ge.s32.totalorder %s14_s12, 4  }
 0x1a1   :  { %13 = sbr.rel (!%p11_p6) target bundleno = 1 (0x1), region = 70 }
 0x1a8   :  { %1134 = vsyncpa [#allocation4], 1 }
 0x1a9   :  { %1136 = vsyncpa [#allocation4 + $0x1], 1 }

</bundles_post_ra>
